<compile_context>
chip_gen: v5e
topology: v5e:2x2
jax: 0.10.0
libtpu: 0.0.40
codegen_flags: <defaults>
</compile_context>

<pallas_src>
import jax
import jax.numpy as jnp
from jax.experimental import pallas as pl
from jax.experimental.pallas import tpu as pltpu

NEG_SLOPE = 0.01      # nn.LeakyReLU() default negative_slope
LANE = 128

# Packed parameter slab layout (f32, [56, 64]):
#   rows  0:16  -> fc1:  cols 0:2  = W1 [16,2],  col 2  = b1
#   rows 16:48  -> fc2:  cols 0:16 = W2 [32,16], col 16 = b2
#   rows 48:51  -> fc3:  cols 0:32 = W3 [3,32],  col 32 = b3
_SLAB_SHAPE = (56, 64)


def _leaky_relu(x):
    return jnp.where(x > 0, x, NEG_SLOPE * x)


def _round_up(n, m):
    return ((n + m - 1) // m) * m


def mlp_kernel(x_ref, p_ref, o_ref):
    # x_ref: (2, TB) f32 — batch on lanes.  p_ref: pinned packed param slab.
    x0 = x_ref[0:1, :]            # (1, TB) — sublane (stride-0) broadcast below
    x1 = x_ref[1:2, :]

    w1c0 = p_ref[0:16, 0:1]       # (16, 1)
    w1c1 = p_ref[0:16, 1:2]       # (16, 1)
    b1 = p_ref[0:16, 2:3]         # (16, 1)
    w2 = p_ref[16:48, 0:16]       # (32, 16)
    b2 = p_ref[16:48, 16:17]      # (32, 1)
    w3 = p_ref[48:51, 0:32]       # (3, 32)
    b3 = p_ref[48:51, 32:33]      # (3, 1)

    # fc1 (K=2): two VPU FMAs.  The TB-wide x rows broadcast over sublanes for
    # free; only the 16-value weight columns need a (tiny) lane splat.
    h1 = w1c0 * x0 + w1c1 * x1 + b1                                   # (16, TB)
    h1 = _leaky_relu(h1)

    # fc2 / fc3 on the MXU with f32 accumulation; with batch on lanes the
    # results (32,TB)/(3,TB) are lane-dense, so the final store is a full-width
    # unmasked vst.  h1/h2 never leave VMEM.
    h2 = jnp.dot(w2, h1, preferred_element_type=jnp.float32) + b2     # (32, TB)
    h2 = _leaky_relu(h2)
    out = jnp.dot(w3, h2, preferred_element_type=jnp.float32) + b3    # (3, TB)
    o_ref[...] = out.astype(o_ref.dtype)


def pack_params(params):
    """Pack (W1,b1,W2,b2,W3,b3) [PyTorch shapes: W=[out,in], b=[out,1]] into one slab."""
    w1, b1, w2, b2, w3, b3 = params
    slab = jnp.zeros(_SLAB_SHAPE, jnp.float32)
    slab = slab.at[0:16, 0:2].set(w1)
    slab = slab.at[0:16, 2:3].set(b1)
    slab = slab.at[16:48, 0:16].set(w2)
    slab = slab.at[16:48, 16:17].set(b2)
    slab = slab.at[48:51, 0:32].set(w3)
    slab = slab.at[48:51, 32:33].set(b3)
    return slab


def _choose_tile(b_pad, block_b, min_steps):
    """Largest multiple-of-128 tile <= block_b that divides b_pad and (when the
    batch is big enough) leaves >= min_steps grid steps for pipelining /
    megacore sharding."""
    if b_pad <= LANE:
        return b_pad
    cap = min(block_b, b_pad)
    if b_pad >= min_steps * LANE:
        cap = min(cap, b_pad // min_steps)
    cap = max(LANE, (cap // LANE) * LANE)
    for tb in range(cap, LANE - 1, -LANE):
        if b_pad % tb == 0:
            return tb
    return LANE


def net_forward_feature_major(x_fm, slab, *, block_b=8192, min_grid_steps=8):
    """Core fused forward: x_fm is [in=2, B] (batch on lanes), returns [3, B]."""
    in_dim, B = x_fm.shape
    out_dim = 3

    b_pad = _round_up(max(B, LANE), LANE)
    if b_pad != B:
        # Pad only the ragged tail; zero-copy when B is already a multiple of 128.
        x_fm = jnp.pad(x_fm, ((0, 0), (0, b_pad - B)))

    tb = _choose_tile(b_pad, block_b, min_grid_steps)
    grid = (b_pad // tb,)

    out_fm = pl.pallas_call(
        mlp_kernel,
        out_shape=jax.ShapeDtypeStruct((out_dim, b_pad), jnp.float32),
        grid=grid,
        in_specs=[
            # x: lane-dense batch tiles, double-buffer pipelined over the grid.
            pl.BlockSpec((in_dim, tb), lambda i: (0, i)),
            # params: constant block index -> DMA'd once, VMEM-resident.
            pl.BlockSpec(_SLAB_SHAPE, lambda i: (0, 0)),
        ],
        out_specs=pl.BlockSpec((out_dim, tb), lambda i: (0, i)),
        compiler_params=pltpu.CompilerParams(
            dimension_semantics=("parallel",),  # v7x megacore shards batch steps
        ),
    )(x_fm, slab)

    if b_pad != B:
        out_fm = out_fm[:, :B]
    return out_fm


def net_forward(x, params, *, block_b=8192, min_grid_steps=8):
    """PyTorch-convention wrapper: x is [B, 2], returns [B, 3].

    The transposes here are thin XLA shims (8/12 B per row); a producer that
    already emits feature-major [2, B] data should call
    net_forward_feature_major directly and skip them.
    """
    slab = pack_params(params)
    out_fm = net_forward_feature_major(
        x.T, slab, block_b=block_b, min_grid_steps=min_grid_steps)
    return out_fm.T


def init_params(key):
    """Deterministic init matching nn.Linear shapes (W=[out,in], b=[out,1])."""
    k = jax.random.split(key, 6)
    w1 = jax.random.normal(k[0], (16, 2), jnp.float32) * 0.5
    b1 = jax.random.normal(k[1], (16, 1), jnp.float32) * 0.1
    w2 = jax.random.normal(k[2], (32, 16), jnp.float32) * 0.25
    b2 = jax.random.normal(k[3], (32, 1), jnp.float32) * 0.1
    w3 = jax.random.normal(k[4], (3, 32), jnp.float32) * 0.25
    b3 = jax.random.normal(k[5], (3, 1), jnp.float32) * 0.1
    return w1, b1, w2, b2, w3, b3


def reference_forward(x, params):
    w1, b1, w2, b2, w3, b3 = params
    h = jax.nn.leaky_relu(x @ w1.T + b1.T, NEG_SLOPE)
    h = jax.nn.leaky_relu(h @ w2.T + b2.T, NEG_SLOPE)
    return h @ w3.T + b3.T


if __name__ == "__main__":
    key = jax.random.PRNGKey(0)
    k_x, k_p = jax.random.split(key)
    params = init_params(k_p)

    # Gridded path: B is a multiple of 128 -> no pad copy; the tile chooser
    # yields 8 grid steps (tb=128) so megacore/pipelining paths are exercised.
    B = 1024
    x = jax.random.normal(k_x, (B, 2), jnp.float32)
    out = jax.block_until_ready(net_forward(x, params))
    ref = reference_forward(x, params)
    assert out.shape == (B, 3), out.shape
    assert jnp.allclose(out, ref, atol=1e-4, rtol=1e-4), "mismatch vs reference (gridded)"

    # Ragged batch: only the tail is padded up to one 128-lane tile, then sliced off.
    B2 = 100
    x2 = jax.random.normal(k_x, (B2, 2), jnp.float32)
    out2 = jax.block_until_ready(net_forward(x2, params))
    ref2 = reference_forward(x2, params)
    assert out2.shape == (B2, 3), out2.shape
    assert jnp.allclose(out2, ref2, atol=1e-4, rtol=1e-4), "mismatch vs reference (ragged)"

    print("KERNEL_OK")
</pallas_src>

<mosaic_0001>
module attributes {stable_mosaic.version = 11 : i64} {
  func.func @mlp_kernel(%arg0: i32, %arg1: memref<2x128xf32, #tpu.memory_space<vmem>>, %arg2: memref<56x64xf32, #tpu.memory_space<vmem>>, %arg3: memref<3x128xf32, #tpu.memory_space<vmem>>) attributes {dimension_semantics = [#tpu.dimension_semantics<parallel>], iteration_bounds = array<i64: 8>, scalar_prefetch = 0 : i64, scratch_operands = 0 : i64, tpu.core_type = #tpu.core_type<tc>, window_params = [{transform_indices = @transform_0, window_bounds = array<i64: 2, 128>}, {pipeline_mode = #tpu.pipeline_mode<synchronous>, transform_indices = @transform_1, window_bounds = array<i64: 56, 64>}, {transform_indices = @transform_2, window_bounds = array<i64: 3, 128>}]} {
    %c0 = arith.constant 0 : index
    %c0_0 = arith.constant 0 : index
    %0 = vector.load %arg1[%c0, %c0_0] : memref<2x128xf32, #tpu.memory_space<vmem>>, vector<1x128xf32>
    %c1 = arith.constant 1 : index
    %c0_1 = arith.constant 0 : index
    %1 = vector.load %arg1[%c1, %c0_1] : memref<2x128xf32, #tpu.memory_space<vmem>>, vector<1x128xf32>
    %c0_2 = arith.constant 0 : index
    %c0_3 = arith.constant 0 : index
    %2 = vector.load %arg2[%c0_2, %c0_3] : memref<56x64xf32, #tpu.memory_space<vmem>>, vector<16x1xf32>
    %c0_4 = arith.constant 0 : index
    %c1_5 = arith.constant 1 : index
    %3 = vector.load %arg2[%c0_4, %c1_5] : memref<56x64xf32, #tpu.memory_space<vmem>>, vector<16x1xf32>
    %c0_6 = arith.constant 0 : index
    %c2 = arith.constant 2 : index
    %4 = vector.load %arg2[%c0_6, %c2] : memref<56x64xf32, #tpu.memory_space<vmem>>, vector<16x1xf32>
    %c16 = arith.constant 16 : index
    %c0_7 = arith.constant 0 : index
    %5 = vector.load %arg2[%c16, %c0_7] : memref<56x64xf32, #tpu.memory_space<vmem>>, vector<32x16xf32>
    %c16_8 = arith.constant 16 : index
    %c16_9 = arith.constant 16 : index
    %6 = vector.load %arg2[%c16_8, %c16_9] : memref<56x64xf32, #tpu.memory_space<vmem>>, vector<32x1xf32>
    %c48 = arith.constant 48 : index
    %c0_10 = arith.constant 0 : index
    %7 = vector.load %arg2[%c48, %c0_10] : memref<56x64xf32, #tpu.memory_space<vmem>>, vector<3x32xf32>
    %c48_11 = arith.constant 48 : index
    %c32 = arith.constant 32 : index
    %8 = vector.load %arg2[%c48_11, %c32] : memref<56x64xf32, #tpu.memory_space<vmem>>, vector<3x1xf32>
    %9 = vector.broadcast %2 : vector<16x1xf32> to vector<16x128xf32>
    %10 = vector.broadcast %0 : vector<1x128xf32> to vector<16x128xf32>
    %11 = arith.mulf %9, %10 : vector<16x128xf32>
    %12 = vector.broadcast %3 : vector<16x1xf32> to vector<16x128xf32>
    %13 = vector.broadcast %1 : vector<1x128xf32> to vector<16x128xf32>
    %14 = arith.mulf %12, %13 : vector<16x128xf32>
    %15 = arith.addf %11, %14 : vector<16x128xf32>
    %16 = vector.broadcast %4 : vector<16x1xf32> to vector<16x128xf32>
    %17 = arith.addf %15, %16 : vector<16x128xf32>
    %cst = arith.constant 0.000000e+00 : f32
    %18 = vector.broadcast %cst : f32 to vector<16x128xf32>
    %19 = arith.cmpf ogt, %17, %18 : vector<16x128xf32>
    %cst_12 = arith.constant 0.00999999977 : f32
    %20 = vector.broadcast %cst_12 : f32 to vector<16x128xf32>
    %21 = arith.mulf %20, %17 : vector<16x128xf32>
    %22 = arith.select %19, %17, %21 : vector<16x128xi1>, vector<16x128xf32>
    %cst_13 = arith.constant dense<0.000000e+00> : vector<32x128xf32>
    %23 = tpu.matmul %5, %22, %cst_13 {dimension_numbers = #tpu.dot_dimension_numbers<[1], [0], [0], [1], [0, 0, 1, 1], [], []>} : vector<32x16xf32>, vector<16x128xf32>, vector<32x128xf32> -> vector<32x128xf32>
    %24 = vector.broadcast %6 : vector<32x1xf32> to vector<32x128xf32>
    %25 = arith.addf %23, %24 : vector<32x128xf32>
    %cst_14 = arith.constant 0.000000e+00 : f32
    %26 = vector.broadcast %cst_14 : f32 to vector<32x128xf32>
    %27 = arith.cmpf ogt, %25, %26 : vector<32x128xf32>
    %cst_15 = arith.constant 0.00999999977 : f32
    %28 = vector.broadcast %cst_15 : f32 to vector<32x128xf32>
    %29 = arith.mulf %28, %25 : vector<32x128xf32>
    %30 = arith.select %27, %25, %29 : vector<32x128xi1>, vector<32x128xf32>
    %cst_16 = arith.constant dense<0.000000e+00> : vector<3x128xf32>
    %31 = tpu.matmul %7, %30, %cst_16 {dimension_numbers = #tpu.dot_dimension_numbers<[1], [0], [0], [1], [0, 0, 1, 1], [], []>} : vector<3x32xf32>, vector<32x128xf32>, vector<3x128xf32> -> vector<3x128xf32>
    %32 = vector.broadcast %8 : vector<3x1xf32> to vector<3x128xf32>
    %33 = arith.addf %31, %32 : vector<3x128xf32>
    %c0_17 = arith.constant 0 : index
    %c0_18 = arith.constant 0 : index
    %34 = vector.load %arg3[%c0_17, %c0_18] : memref<3x128xf32, #tpu.memory_space<vmem>>, vector<3x128xf32>
    tpu.vector_store %arg3[%c0_17, %c0_18], %33 {strides = array<i32>} : memref<3x128xf32, #tpu.memory_space<vmem>>, vector<3x128xf32>,
    return
  }
  func.func @transform_0(%arg0: i32) -> (i32, i32) {
    %c0_i32 = arith.constant 0 : i32
    %c0_i32_0 = arith.constant 0 : i32
    return %c0_i32, %arg0 : i32, i32
  }
  func.func @transform_1(%arg0: i32) -> (i32, i32) {
    %c0_i32 = arith.constant 0 : i32
    %c0_i32_0 = arith.constant 0 : i32
    %c0_i32_1 = arith.constant 0 : i32
    return %c0_i32, %c0_i32_0 : i32, i32
  }
  func.func @transform_2(%arg0: i32) -> (i32, i32) {
    %c0_i32 = arith.constant 0 : i32
    %c0_i32_0 = arith.constant 0 : i32
    return %c0_i32, %arg0 : i32, i32
  }
}

</mosaic_0001>

<bundles_post_ra>
// kernel: tpu_custom_call.1
= control target key start
LH: loop header
LB: loop body
LE: loop exit
PB: predicated region body
PF: predicated region fallthrough
CT: control target
= control target key end

     0   :  { %7 = vsyncpa [#allocation3], 0  ;;  %s817_s0 = inlined_call_operand.hbm [shape: f32[2,1024], index: 0, kind: input, shape index: {}]   ;;  %s818_s1 = inlined_call_operand.hbm [shape: f32[56,64], index: 1, kind: input, shape index: {}]   ;;  %s819_s2 = inlined_call_operand.hbm [shape: f32[3,1024], index: 2, kind: output, shape index: {}]  }
   0x1   :  { %9 = vsyncpa [#allocation3 + $0x1], 0 }
   0x2   :  { %10 = vsyncpa [#allocation6], 0 }
   0x3   :  { %11 = vsyncpa [#allocation4], 0 }
   0x4   :  { %13 = vsyncpa [#allocation4 + $0x1], 0  ;;  %s678_s9 = smov 0   ;;  %s680_s10 = smov 0  }
   0x5   :  { %s682_s11 = smov 0   ;;  %s684_s12 = smov 0  }
   0x6 LB: > { %s108_s15 = sshll.u32 %s818_s1, 4  ;;  %s702_s16 = sadd.s32 4294967295, %s653_s12   ;;  %s653_s12 = sphi %s684_s12, %s828_s12   ;;  %s649_s11 = sphi %s682_s11, %s827_s11   ;;  %s645_s10 = sphi %s680_s10, %s826_s10   ;;  %s641_s9 = sphi %s678_s9, %s825_s9   ;;  %s109_s15 = int_to_ptr.hbm [resolvable:$true] %s108_s15 }
   0x7   : > { %p425_p0 = scmp.ge.s32.totalorder %s653_s12, 1  ;;  %p40_p1 = scmp.eq.s32.totalorder %s702_s16, 0 }
   0x8   : > { %p97_p2 = scmp.lt.s32.totalorder %s653_s12, 9  ;;  %s655_s18 = smov [#allocation5]  }
   0x9   : > { %s110_s19 = sshll.u32 %s655_s18, 4  ;;  %s656_s20 = smov 128   ;;  %s111_s19 = int_to_ptr.vmem [resolvable:$true] %s110_s19 }
   0xa   : > { %p707_p3 = pnand %p425_p0, %p97_p2  ;;  %s657_s21 = smov 8  }
   0xb   : > { %s424_s22 = sadd.s32 4294967294, %s653_s12   ;;  %s717_s23 = sadd.s32 1, %s653_s12  }
   0xc   : > { %p455_p4 = pneg %p707_p3  ;;  %s26_s24 = sadd.s32 1, %s649_s11 }
   0xd   : > { %s23_s25 = ssub.s32 %s653_s12, %s717_s23  ;;  %p33_p6 = scmp.ne.s32.totalorder %s649_s11, %s645_s10 }
   0xe   : > { %p456_p5 = pnand %p455_p4, %p40_p1  ;;  %p24_p7 = scmp.eq.s32.totalorder %s23_s25, 0 }
   0xf   : > { %p34_p8 = scmp.eq.s32.totalorder %s653_s12, 0  ;;  %p39_p9 = scmp.ne.s32.totalorder %s645_s10, %s641_s9 }
  0x10   : > { %458 = dma.hbm_to_vmem [thread:$0]  (!%p456_p5), %s109_s15, 896, %s111_s19, [#allocation6], %s656_s20, %s656_s20, %s657_s21  }
  0x11   : > { %p84_p10 = scmp.eq.s32.totalorder %s702_s16, 7  ;;  %p733_p11 = por %p40_p1, %p39_p9 }
  0x12   : > { %s729_s26 = scalar_select %p24_p7, %s649_s11, %s26_s24  }
  0x13   : > { %p737_p12 = por %p84_p10, %p33_p6  ;;  %p90_p13 = scmp.eq.s32.totalorder %s424_s22, 7 }
  0x14   : > { %p35_p0 = por %p34_p8, %p33_p6  ;;  %s124_s29 = sand.u32 1, %s649_s11  }
  0x15   : > { %p742_p2 = por %p90_p13, %p39_p9  ;;  %p468_p4 = scmp.lt.s32.totalorder %s653_s12, 8 }
  0x16   : > { %s428_s3 = sshll.u32 %s124_s29, 1  ;;  %s429_s4 = sshll.u32 %s653_s12, 1 }
  0x17   : > { %s132_s7 = scalar_lea.hbm %s817_s0, %s429_s4  ;;  %s128_s13 = scalar_lea.vmem [#allocation2], %s428_s3 }
  0x18   : > { %s134_s8 = sshll.u32 %s132_s7, 4  ;;  %s136_s14 = sshll.u32 %s128_s13, 4  ;;  %s135_s8 = int_to_ptr.hbm [resolvable:$true] %s134_s8  ;;  %s137_s14 = int_to_ptr.vmem [resolvable:$true] %s136_s14 }
  0x19   : > { %p751_p5 = pnand %p468_p4, %p35_p0  ;;  %s125_s18 = scalar_lea.sflag [#allocation3], %s124_s29 }
  0x1a   : > { %s553_s19 = sshra.s32 %s135_s8, 4  ;;  %s560_s24 = scalar_lea.hbm %s817_s0, 16  ;;  %s554_s19 = int_to_ptr.hbm [resolvable:$true] %s553_s19 }
  0x1b   : > { %s555_s20 = scalar_lea.hbm %s554_s19, 2  ;;  %p557_p7 = pneg %p751_p5 }
  0x1c   : > { %p556_p6 = scmp.ne.s32.totalorder %s554_s19, %s555_s20  ;;  %p561_p10 = scmp.lt.s32.totalorder %s554_s19, %s817_s0 }
  0x1d   : > { %p562_p13 = scmp.lt.s32.totalorder %s560_s24, %s555_s20 }
  0x1e   : > { %p558_p8 = pnand %p557_p7, %p556_p6 }
  0x1f   : > { %p563_p0 = por %p562_p13, %p561_p10 }
  0x20   : > { %p559_p9 = pneg %p558_p8 }
  0x22   : > { %p564_p4 = pnand %p563_p0, %p559_p9 }
  0x24   : > { %567 = shalt.err (!%p564_p4)
}
  0x25   : > { %462 = dma.hbm_to_vmem [thread:$0]  (!%p751_p5), %s135_s8, 32, %s137_s14, %s125_s18  }
  0x26   : > { %145 = sbr.rel (%p707_p3) target bundleno = 465 (0x1d1), region = 28  ;;  %s768_s29 = sand.u32 (!%p707_p3), 1, %s645_s10  }
  0x27   : > { %s431_s4 = sshll.u32 (!%p707_p3), %s768_s29, 1  ;;  %s148_s5 = scalar_lea.sflag (!%p707_p3), [#allocation3], %s768_s29 }
  0x28   : > { %s772_s6 = scalar_lea.vmem (!%p707_p3), [#allocation2], %s431_s4 }
  0x2b   : > { %628 = dma.done.wait (%p733_p11), %s148_s5, 32  }
  0x2c   : > { %630 = vsyncadd (%p733_p11), %s148_s5, 4294967264 }
  0x2d   : > { %632 = dma.done.wait (%p40_p1), [#allocation6], 896  }
  0x2e   : > { %634 = vsyncadd (%p40_p1), [#allocation6], 4294966400  ;;  %v658_v0 = vmov 0   ;;  %v659_v1 = vmov 2   ;;  %v181_v2 = vld [vmem:[#allocation5 + $0x8] sm:$0xff]  ;;  %v180_v3 = vld [vmem:[#allocation5] sm:$0xff] }
  0x2f   : > { %513 = vset.pattern.permute.xlu1 %v658_v0  ;;  %511 = vset.pattern.permute.xlu0 %v658_v0  ;;  %v660_v4 = vmov 1   ;;  %v183_v5 = vld [vmem:[#allocation5 + $0x18] sm:$0xff]  ;;  %v185_v6 = vld [vmem:[#allocation5 + $0x28] sm:$0xff]  ;;  %v661_v7 = vmov 16   ;;  %v184_v10 = vld [vmem:[#allocation5 + $0x20] sm:$0xff]  ;;  %vm249_vm2 = vcmask 130048  }
  0x30   : > { %515 = vset.pattern.permute.xlu2 %v659_v1  ;;  %194 = vperm.xlu0 %511, %v181_v2   ;;  %v521_v12 = vld [vmem:[%s772_s6] ss:$0 sm:$0xff]  ;;  %v522_v13 = vld [vmem:[%s772_s6 + $0x1] ss:$0 sm:$0xff]  ;;  %v182_v14 = vld [vmem:[#allocation5 + $0x10] sm:$0xff]  ;;  %v662_v31 = vmov 32  }
  0x31   : > { %189 = vperm.xlu1 %513, %v180_v3   ;;  %218 = vperm.xlu2 %515, %v181_v2   ;;  %v186_v30 = vld [vmem:[#allocation5 + $0x30] sm:$0x7]  ;;  %vm304_vm7 = vcmask 261120   ;;  %s433_s17 = sshll.u32 %s768_s29, 2  ;;  %s440_s27 = sshll.u32 %s702_s16, 2 }
  0x32   : > { %s339_s13 = scalar_lea.hbm %s819_s2, %s440_s27  ;;  %s177_s14 = scalar_lea.vmem [#allocation7], %s433_s17 }
  0x33   : > { %s341_s15 = sshll.u32 %s177_s14, 4  ;;  %s343_s18 = sshll.u32 %s339_s13, 4  ;;  %s342_s15 = int_to_ptr.vmem [resolvable:$true] %s341_s15  ;;  %s344_s18 = int_to_ptr.hbm [resolvable:$true] %s343_s18 }
  0x34   : > { %s329_s19 = scalar_lea.sflag [#allocation4], %s768_s29  ;;  %s597_s20 = sshra.s32 %s344_s18, 4  ;;  %s598_s20 = int_to_ptr.hbm [resolvable:$true] %s597_s20 }
  0x35   : > { %s599_s21 = scalar_lea.hbm %s598_s20, 4  ;;  %s603_s24 = scalar_lea.hbm %s819_s2, 32 }
  0x36   : > { %p600_p1 = scmp.ne.s32.totalorder %s598_s20, %s599_s21  ;;  %p604_p5 = scmp.lt.s32.totalorder %s598_s20, %s819_s2 }
  0x37   : > { %p605_p6 = scmp.lt.s32.totalorder %s603_s24, %s599_s21 }
  0x38   : > { %512 = vset.pattern.permute.xlu0 %v660_v4  ;;  %p601_p3 = pnand %p600_p1, %p737_p12 }
  0x39   : > { %514 = vset.pattern.permute.xlu1 %v660_v4  ;;  %205 = vperm.xlu0 %512, %v181_v2   ;;  %p606_p7 = por %p605_p6, %p604_p5 }
  0x3a   : > { %201 = vperm.xlu1 %514, %v180_v3   ;;  %214 = vperm.xlu2 %515, %v180_v3   ;;  %p602_p11 = pneg %p601_p3 }
  0x3c   : > { %p607_p8 = pnand %p606_p7, %p602_p11 }
  0x41   : > { %518 = vset.pattern.permute.xlu0 %v661_v7 }
  0x42   : > { %516 = vset.pattern.permute.xlu1 %v661_v7  ;;  %236 = vperm.xlu0 %518, %v183_v5  }
  0x43   : > { %246 = vperm.xlu1 %516, %v185_v6   ;;  %517 = vset.pattern.permute.xlu2 %v661_v7 }
  0x44   : > { %241 = vperm.xlu2 %517, %v184_v10  }
  0x4a   : > { %520 = vset.pattern.permute.xlu0 %v662_v31 }
  0x4b   : > { %231 = vperm.xlu1 %516, %v182_v14  }
  0x4c   : > { %519 = vset.pattern.permute.xlu2 %v662_v31 }
  0x4d   : > { %301 = vperm.xlu2 %519, %v186_v30  }
  0x8b   : > { %v219_v11 = vpop.permute.xlu2 %218 }
  0x94   : > { %v215_v23 = vpop.permute.xlu2 %214 }
  0x9e   : > { %v242_v40 = vpop.permute.xlu2 %241 }
  0xa2   : > { %v195_v8 = vpop.permute.xlu0 %194 }
  0xa3   : > { %v190_v9 = vpop.permute.xlu1 %189  ;;  %v199_v17 = vmul.f32 %v521_v12, %v195_v8 }
  0xa4   : > { %v198_v18 = vmul.f32 %v521_v12, %v190_v9 }
  0xa7   : > { %v302_v52 = vpop.permute.xlu2 %301 }
  0xab   : > { %v206_v15 = vpop.permute.xlu0 %205 }
  0xac   : > { %v202_v16 = vpop.permute.xlu1 %201  ;;  %v210_v19 = vmul.f32 %v522_v13, %v206_v15 }
  0xad   : > { %v209_v20 = vmul.f32 %v522_v13, %v202_v16 }
  0xae   : > { %v212_v21 = vadd.f32 %v210_v19, %v199_v17 }
  0xaf   : > { %v211_v22 = vadd.f32 %v209_v20, %v198_v18 }
  0xb0   : > { %v222_v24 = vadd.f32 %v219_v11, %v212_v21 }
  0xb1   : > { %v221_v25 = vadd.f32 %v215_v23, %v211_v22 }
  0xb2   : > { %vm224_vm0 = vcmp.gt.f32.partialorder %v222_v24, 0.0  ;;  %v226_v26 = vmul.f32 0.01, %v222_v24 }
  0xb3   : > { %v225_v27 = vmul.f32 0.01, %v221_v25  ;;  %vm223_vm1 = vcmp.gt.f32.partialorder %v221_v25, 0.0 }
  0xb4   : > { %v228_v28 = vsel %vm224_vm0, %v222_v24, %v226_v26  ;;  %v237_v36 = vpop.permute.xlu0 %236 }
  0xb5   : > { %272 = vmatpush.msra.mxu0 %v228_v28  ;;  %443 = vmatpush.msra.mxu2 %v228_v28  ;;  %v227_v29 = vsel %vm223_vm1, %v221_v25, %v225_v27  ;;  %v247_v32 = vpop.permute.xlu1 %246 }
  0xb6   : > { %444 = vmatpush.msra.mxu3 %v228_v28 }
  0xb7   : > { %273 = vmatpush.msra.mxu0 %v227_v29  ;;  %445 = vmatpush.msra.mxu2 %v227_v29 }
  0xb8   : > { %446 = vmatpush.msra.mxu3 %v227_v29  ;;  %435 = vmatmul.msk.f32.vlgmr.msra.gmra.mxu2 %vm249_vm2, %v183_v5 }
  0xb9   : > { %437 = vmatmul.msk.f32.vlgmr.msra.gmra.mxu3 %vm249_vm2, %v185_v6  ;;  %434 = vmatmul.msk.f32.vlgmr.msra.gmra.mxu0 %vm249_vm2, %v182_v14 }
  0xbd   : > { %v232_v38 = vpop.permute.xlu1 %231 }
  0xc0   : > { %436 = vmatmul.msk.f32.gmra.mxu2 %vm249_vm2, %v184_v10 }
 0x136   : > { %v275_v39 = vpop.f32.mrf.mxu0 }
 0x137   : > { %v276_v44 = vadd.f32 %v275_v39, %v232_v38 }
 0x139   : > { %v291_v49 = vmul.f32 0.01, %v276_v44  ;;  %vm287_vm6 = vcmp.gt.f32.partialorder %v276_v44, 0.0 }
 0x13b   : > { %v278_v33 = vpop.f32.mrf.mxu2  ;;  %v295_v51 = vsel %vm287_vm6, %v276_v44, %v291_v49 }
 0x13c   : > { %v284_v34 = vpop.f32.mrf.mxu3  ;;  %v279_v42 = vadd.f32 %v278_v33, %v237_v36 }
 0x13d   : > { %v285_v35 = vadd.f32 %v284_v34, %v247_v32 }
 0x13e   : > { %v292_v47 = vmul.f32 0.01, %v279_v42  ;;  %vm288_vm5 = vcmp.gt.f32.partialorder %v279_v42, 0.0 }
 0x13f   : > { %vm290_vm3 = vcmp.gt.f32.partialorder %v285_v35, 0.0  ;;  %v294_v37 = vmul.f32 0.01, %v285_v35 }
 0x140   : > { %v296_v50 = vsel %vm288_vm5, %v279_v42, %v292_v47 }
 0x141   : > { %v298_v41 = vsel %vm290_vm3, %v285_v35, %v294_v37 }
 0x142   : > { %319 = vmatpush.msra.mxu1 %v298_v41 }
 0x143   : > { %v281_v43 = vpop.f32.mrf.mxu2 }
 0x144   : > { %v282_v45 = vadd.f32 %v281_v43, %v242_v40 }
 0x146   : > { %vm289_vm4 = vcmp.gt.f32.partialorder %v282_v45, 0.0  ;;  %v293_v46 = vmul.f32 0.01, %v282_v45 }
 0x148   : > { %v297_v48 = vsel %vm289_vm4, %v282_v45, %v293_v46 }
 0x149   : > { %320 = vmatpush.msra.mxu1 %v297_v48 }
 0x14b   : > { %321 = vmatpush.msra.mxu1 %v296_v50 }
 0x14d   : > { %322 = vmatpush.msra.mxu1 %v295_v51 }
 0x14e   : > { %438 = vmatmul.msk.f32.vlgmr.msra.gmra.mxu1 %vm304_vm7, %v186_v30 }
 0x1cb   : > { %v324_v53 = vpop.f32.mrf.mxu1 }
 0x1cc   : > { %v325_v54 = vadd.f32 %v324_v53, %v302_v52 }
 0x1ce   : > { %327 = vst [vmem:[%s177_s14] sm:$0x7] %v325_v54 }
 0x1cf   : > { %610 = shalt.err (!%p607_p8)
}
 0x1d0   : > { %453 = dma.vmem_to_hbm [thread:$0]  (%p737_p12), %s342_s15, 64, %s344_s18, %s329_s19  }
 0x1d1 PF: > { %p470_p9 = scmp.ge.s32.totalorder %s653_s12, 2  ;;  %s355_s29 = sand.u32 1, %s641_s9  }
 0x1d2   : > { %s356_s4 = scalar_lea.sflag [#allocation4], %s355_s29 }
 0x1d3   : > { %p464_p10 = pnand %p470_p9, %p742_p2 }
 0x1d5   : > { %p465_p13 = pneg %p464_p10 }
 0x1d7   : > { %636 = dma.done.wait (%p465_p13), %s356_s4, 64  }
 0x1d8   : > { %638 = vsyncadd (%p465_p13), %s356_s4, 4294967232  ;;  %p16_p0 = scmp.ge.s32.totalorder %s717_s23, 10   ;;  %s825_s9 = smov %s645_s10 }
 0x1d9   : > { %s826_s10 = smov %s649_s11  ;;  %s827_s11 = smov %s729_s26 }
 0x1da   : > { %s828_s12 = smov %s717_s23  ;;  %18 = sbr.rel (!%p16_p0) target bundleno = 6 (0x6), region = 77 }
 0x1df   :  { %362 = vsyncpa [#allocation3], 1 }
 0x1e0   :  { %364 = vsyncpa [#allocation3 + $0x1], 1 }
 0x1e1   :  { %365 = vsyncpa [#allocation6], 1 }
 0x1e2   :  { %366 = vsyncpa [#allocation4], 1 }
 0x1e3   :  { %368 = vsyncpa [#allocation4 + $0x1], 1 }

</bundles_post_ra>
